<compile_context>
chip_gen: v6e
topology: v6e:2x2x1
jax: 0.10.0
libtpu: 0.0.40
codegen_flags: <defaults>
</compile_context>

<pallas_src>
import jax
import jax.numpy as jnp
from jax.experimental import pallas as pl
from jax.experimental.pallas import tpu as pltpu


def _round_up(n, m):
    return ((n + m - 1) // m) * m


def gtp_kernel(x_ref, w1_ref, b1_ref, w2_ref, b2_ref, o_ref):
    """Fused forward: h = relu(x@W1+b1); y = h@W2+b2; loc = pm_z + gate*(pm_b-pm_z)."""
    z = o_ref.shape[-1]
    x = x_ref[...]

    # First layer, fused across the 4 branches: (bt, D) @ (D, 4T) -> (bt, 4T).
    h = (jnp.dot(x, w1_ref[...], preferred_element_type=jnp.float32)
         + b1_ref[...].astype(jnp.float32))
    h = jnp.maximum(h, 0.0)

    # Second layer, fused & block-structured: (bt, 4T) @ (4T, 3z) -> (bt, 3z).
    # Columns: [gate_preact | pm_b | pm_z]; the 0.5*(relu_b+relu_z) sum is inside W2.
    y = (jnp.dot(h, w2_ref[...].astype(jnp.float32),
                 preferred_element_type=jnp.float32)
         + b2_ref[...].astype(jnp.float32))

    gate = jax.nn.sigmoid(y[:, 0:z])
    pm_b = y[:, z:2 * z]
    pm_z = y[:, 2 * z:3 * z]
    loc = pm_z + gate * (pm_b - pm_z)
    o_ref[...] = loc.astype(o_ref.dtype)


def gated_transition_payoff(combined_p, params, *, batch_tile=2048):
    """combined_p: (B, 14 + z_dim). Returns loc: (B, z_dim)."""
    B, D = combined_p.shape
    assert D >= 15, "combined_p must be (B, 14 + z_dim)"
    z = D - 14
    T = params["gate_b_w"].shape[1]
    wdt = params["gate_b_w"].dtype

    # Fold the obs/prev column split into zero-padded (D, T) weight blocks.
    def pad_obs(w):   # (14, T) -> (D, T): zeros over the `prev` rows
        return jnp.concatenate([w, jnp.zeros((z, w.shape[1]), w.dtype)], axis=0)

    def pad_prev(w):  # (z, T) -> (D, T): zeros over the `obs` rows
        return jnp.concatenate([jnp.zeros((14, w.shape[1]), w.dtype), w], axis=0)

    # --- Fused first layer: columns [gate_b | gate_z | pm_b | pm_z] -> (D, 4T) ---
    w1 = jnp.concatenate([pad_obs(params["gate_b_w"]), pad_prev(params["gate_z_w"]),
                          pad_obs(params["pm_b_w"]), pad_prev(params["pm_z_w"])], axis=1)
    b1 = jnp.concatenate([params["gate_b_b"], params["gate_z_b"],
                          params["pm_b_b"], params["pm_z_b"]], axis=1)          # (1, 4T)

    # --- Fused second layer: (4T, 3z). Row blocks match the W1 column order.
    # gate = sigmoid(0.5*(h_gb + h_gz) @ W_ga + b_ga) is realized by putting 0.5*W_ga
    # in BOTH gate-hidden row blocks (linearity), so no hidden slicing is needed.
    zeros = lambda r, c: jnp.zeros((r, c), wdt)
    half_ga = 0.5 * params["gate_all_w"]
    row_gb = jnp.concatenate([half_ga, zeros(T, 2 * z)], axis=1)
    row_gz = row_gb
    row_pb = jnp.concatenate([zeros(T, z), params["pm_b_out_w"], zeros(T, z)], axis=1)
    row_pz = jnp.concatenate([zeros(T, 2 * z), params["pm_z_out_w"]], axis=1)
    w2 = jnp.concatenate([row_gb, row_gz, row_pb, row_pz], axis=0)              # (4T, 3z)
    b2 = jnp.concatenate([params["gate_all_b"], params["pm_b_out_b"],
                          params["pm_z_out_b"]], axis=1)                        # (1, 3z)

    # --- tile / grid: no input padding, no forced multi-step grid.
    bt = _round_up(max(8, min(batch_tile, B)), 8)
    grid = (pl.cdiv(B, bt),)   # partial final block is clipped by Pallas

    # Constant index_map: weights/biases DMA'd once, resident in VMEM across steps.
    def const_spec(arr):
        return pl.BlockSpec(arr.shape, lambda i: (0, 0))

    out = pl.pallas_call(
        gtp_kernel,
        out_shape=jax.ShapeDtypeStruct((B, z), combined_p.dtype),
        grid_spec=pltpu.PrefetchScalarGridSpec(
            num_scalar_prefetch=0,
            grid=grid,
            in_specs=[pl.BlockSpec((bt, D), lambda i: (i, 0)),
                      const_spec(w1), const_spec(b1),
                      const_spec(w2), const_spec(b2)],
            out_specs=pl.BlockSpec((bt, z), lambda i: (i, 0)),
        ),
        compiler_params=pltpu.CompilerParams(
            dimension_semantics=("parallel",),
        ),
    )(combined_p, w1, b1, w2, b2)
    return out


def init_params(key, z_dim, transition_dim, dtype=jnp.float32):
    """Deterministic init for the layers used by forward() (returns loc only)."""
    def linear(k, din, dout):
        kw, kb = jax.random.split(k)
        s = 1.0 / (din ** 0.5)
        w = (jax.random.normal(kw, (din, dout), jnp.float32) * s).astype(dtype)
        b = (jax.random.normal(kb, (1, dout), jnp.float32) * s).astype(dtype)
        return w, b

    ks = jax.random.split(key, 7)
    p = {}
    p["gate_b_w"], p["gate_b_b"] = linear(ks[0], 14, transition_dim)
    p["gate_z_w"], p["gate_z_b"] = linear(ks[1], z_dim, transition_dim)
    p["gate_all_w"], p["gate_all_b"] = linear(ks[2], transition_dim, z_dim)
    p["pm_b_w"], p["pm_b_b"] = linear(ks[3], 14, transition_dim)
    p["pm_b_out_w"], p["pm_b_out_b"] = linear(ks[4], transition_dim, z_dim)
    p["pm_z_w"], p["pm_z_b"] = linear(ks[5], z_dim, transition_dim)
    p["pm_z_out_w"], p["pm_z_out_b"] = linear(ks[6], transition_dim, z_dim)
    return p


def gated_transition_payoff_ref(combined_p, p):
    """Pure-JAX reference mirroring the PyTorch forward (returns loc)."""
    obs = combined_p[:, :14]
    prev = combined_p[:, 14:]
    relu = lambda v: jnp.maximum(v, 0.0)
    _gate = 0.5 * (relu(obs @ p["gate_b_w"] + p["gate_b_b"])
                   + relu(prev @ p["gate_z_w"] + p["gate_z_b"]))
    gate = jax.nn.sigmoid(_gate @ p["gate_all_w"] + p["gate_all_b"])
    pm_b = relu(obs @ p["pm_b_w"] + p["pm_b_b"]) @ p["pm_b_out_w"] + p["pm_b_out_b"]
    pm_z = relu(prev @ p["pm_z_w"] + p["pm_z_b"]) @ p["pm_z_out_w"] + p["pm_z_out_b"]
    return pm_z * (1.0 - gate) + pm_b * gate


if __name__ == "__main__":
    key = jax.random.PRNGKey(0)
    kp, kx1, kx2 = jax.random.split(key, 3)

    z_dim, transition_dim = 2, 32
    D = 14 + z_dim
    params = init_params(kp, z_dim, transition_dim)

    # Small batch: single-grid-step path.
    B_small = 16
    x_small = jax.random.normal(kx1, (B_small, D), jnp.float32)
    out_small = jax.block_until_ready(gated_transition_payoff(x_small, params))
    ref_small = gated_transition_payoff_ref(x_small, params)
    assert out_small.shape == (B_small, z_dim), out_small.shape
    assert jnp.allclose(out_small, ref_small, atol=1e-4, rtol=1e-4), (
        float(jnp.max(jnp.abs(out_small - ref_small))))

    # Non-divisible batch: multi-step grid with a clipped partial final block (no pad copy).
    B_big = 300
    x_big = jax.random.normal(kx2, (B_big, D), jnp.float32)
    out_big = jax.block_until_ready(
        gated_transition_payoff(x_big, params, batch_tile=128))
    ref_big = gated_transition_payoff_ref(x_big, params)
    assert out_big.shape == (B_big, z_dim), out_big.shape
    assert jnp.allclose(out_big, ref_big, atol=1e-4, rtol=1e-4), (
        float(jnp.max(jnp.abs(out_big - ref_big))))

    print("KERNEL_OK")
</pallas_src>

<mosaic_0001>
module attributes {stable_mosaic.version = 11 : i64} {
  func.func @gtp_kernel(%arg0: i32, %arg1: memref<16x16xf32, #tpu.memory_space<vmem>>, %arg2: memref<16x128xf32, #tpu.memory_space<vmem>>, %arg3: memref<1x128xf32, #tpu.memory_space<vmem>>, %arg4: memref<128x6xf32, #tpu.memory_space<vmem>>, %arg5: memref<1x6xf32, #tpu.memory_space<vmem>>, %arg6: memref<16x2xf32, #tpu.memory_space<vmem>>) attributes {dimension_semantics = [#tpu.dimension_semantics<parallel>], iteration_bounds = array<i64: 1>, scalar_prefetch = 0 : i64, scratch_operands = 0 : i64, tpu.core_type = #tpu.core_type<tc>, window_params = [{transform_indices = @transform_0, window_bounds = array<i64: 16, 16>}, {pipeline_mode = #tpu.pipeline_mode<synchronous>, transform_indices = @transform_1, window_bounds = array<i64: 16, 128>}, {pipeline_mode = #tpu.pipeline_mode<synchronous>, transform_indices = @transform_2, window_bounds = array<i64: 1, 128>}, {pipeline_mode = #tpu.pipeline_mode<synchronous>, transform_indices = @transform_3, window_bounds = array<i64: 128, 6>}, {pipeline_mode = #tpu.pipeline_mode<synchronous>, transform_indices = @transform_4, window_bounds = array<i64: 1, 6>}, {transform_indices = @transform_5, window_bounds = array<i64: 16, 2>}]} {
    %c0 = arith.constant 0 : index
    %c0_0 = arith.constant 0 : index
    %0 = vector.load %arg1[%c0, %c0_0] : memref<16x16xf32, #tpu.memory_space<vmem>>, vector<16x16xf32>
    %c0_1 = arith.constant 0 : index
    %c0_2 = arith.constant 0 : index
    %1 = vector.load %arg2[%c0_1, %c0_2] : memref<16x128xf32, #tpu.memory_space<vmem>>, vector<16x128xf32>
    %cst = arith.constant dense<0.000000e+00> : vector<16x128xf32>
    %2 = tpu.matmul %0, %1, %cst {dimension_numbers = #tpu.dot_dimension_numbers<[1], [0], [0], [1], [0, 0, 1, 1], [], []>} : vector<16x16xf32>, vector<16x128xf32>, vector<16x128xf32> -> vector<16x128xf32>
    %c0_3 = arith.constant 0 : index
    %c0_4 = arith.constant 0 : index
    %3 = vector.load %arg3[%c0_3, %c0_4] : memref<1x128xf32, #tpu.memory_space<vmem>>, vector<1x128xf32>
    %4 = vector.broadcast %3 : vector<1x128xf32> to vector<16x128xf32>
    %5 = arith.addf %2, %4 : vector<16x128xf32>
    %cst_5 = arith.constant 0.000000e+00 : f32
    %6 = vector.broadcast %cst_5 : f32 to vector<16x128xf32>
    %7 = arith.maximumf %5, %6 : vector<16x128xf32>
    %c0_6 = arith.constant 0 : index
    %c0_7 = arith.constant 0 : index
    %8 = vector.load %arg4[%c0_6, %c0_7] : memref<128x6xf32, #tpu.memory_space<vmem>>, vector<128x6xf32>
    %cst_8 = arith.constant dense<0.000000e+00> : vector<16x6xf32>
    %9 = tpu.matmul %7, %8, %cst_8 {dimension_numbers = #tpu.dot_dimension_numbers<[1], [0], [0], [1], [0, 0, 1, 1], [], []>} : vector<16x128xf32>, vector<128x6xf32>, vector<16x6xf32> -> vector<16x6xf32>
    %c0_9 = arith.constant 0 : index
    %c0_10 = arith.constant 0 : index
    %10 = vector.load %arg5[%c0_9, %c0_10] : memref<1x6xf32, #tpu.memory_space<vmem>>, vector<1x6xf32>
    %11 = vector.broadcast %10 : vector<1x6xf32> to vector<16x6xf32>
    %12 = arith.addf %9, %11 : vector<16x6xf32>
    %13 = vector.extract_strided_slice %12 {offsets = [0, 0], sizes = [16, 2], strides = [1, 1]} : vector<16x6xf32> to vector<16x2xf32>
    %14 = arith.negf %13 : vector<16x2xf32>
    %15 = math.exp %14 : vector<16x2xf32>
    %cst_11 = arith.constant 1.000000e+00 : f32
    %16 = vector.broadcast %cst_11 : f32 to vector<16x2xf32>
    %17 = arith.addf %16, %15 : vector<16x2xf32>
    %18 = arith.divf %16, %17 : vector<16x2xf32>
    %19 = vector.extract_strided_slice %12 {offsets = [0, 2], sizes = [16, 2], strides = [1, 1]} : vector<16x6xf32> to vector<16x2xf32>
    %20 = vector.extract_strided_slice %12 {offsets = [0, 4], sizes = [16, 2], strides = [1, 1]} : vector<16x6xf32> to vector<16x2xf32>
    %21 = arith.subf %19, %20 : vector<16x2xf32>
    %22 = arith.mulf %18, %21 : vector<16x2xf32>
    %23 = arith.addf %20, %22 : vector<16x2xf32>
    %c0_12 = arith.constant 0 : index
    %c0_13 = arith.constant 0 : index
    %24 = vector.load %arg6[%c0_12, %c0_13] : memref<16x2xf32, #tpu.memory_space<vmem>>, vector<16x2xf32>
    tpu.vector_store %arg6[%c0_12, %c0_13], %23 {strides = array<i32>} : memref<16x2xf32, #tpu.memory_space<vmem>>, vector<16x2xf32>,
    return
  }
  func.func @transform_0(%arg0: i32) -> (i32, i32) {
    %c0_i32 = arith.constant 0 : i32
    %c0_i32_0 = arith.constant 0 : i32
    return %arg0, %c0_i32 : i32, i32
  }
  func.func @transform_1(%arg0: i32) -> (i32, i32) {
    %c0_i32 = arith.constant 0 : i32
    %c0_i32_0 = arith.constant 0 : i32
    %c0_i32_1 = arith.constant 0 : i32
    return %c0_i32, %c0_i32_0 : i32, i32
  }
  func.func @transform_2(%arg0: i32) -> (i32, i32) {
    %c0_i32 = arith.constant 0 : i32
    %c0_i32_0 = arith.constant 0 : i32
    %c0_i32_1 = arith.constant 0 : i32
    return %c0_i32, %c0_i32_0 : i32, i32
  }
  func.func @transform_3(%arg0: i32) -> (i32, i32) {
    %c0_i32 = arith.constant 0 : i32
    %c0_i32_0 = arith.constant 0 : i32
    %c0_i32_1 = arith.constant 0 : i32
    return %c0_i32, %c0_i32_0 : i32, i32
  }
  func.func @transform_4(%arg0: i32) -> (i32, i32) {
    %c0_i32 = arith.constant 0 : i32
    %c0_i32_0 = arith.constant 0 : i32
    %c0_i32_1 = arith.constant 0 : i32
    return %c0_i32, %c0_i32_0 : i32, i32
  }
  func.func @transform_5(%arg0: i32) -> (i32, i32) {
    %c0_i32 = arith.constant 0 : i32
    %c0_i32_0 = arith.constant 0 : i32
    return %arg0, %c0_i32 : i32, i32
  }
}

</mosaic_0001>

<bundles_post_ra>
// kernel: tpu_custom_call.1
= control target key start
LH: loop header
LB: loop body
LE: loop exit
PB: predicated region body
PF: predicated region fallthrough
CT: control target
= control target key end

     0   :  { %vm31_vm0 = vcmask 130048   ;;  %vm263_vm1 = vcmask 15360   ;;  %s458_s1 = inlined_call_operand.vmem [shape: f32[16,128], index: 1, kind: input, shape index: {}]   ;;  %s459_s0 = inlined_call_operand.vmem [shape: f32[16,16], index: 0, kind: input, shape index: {}]   ;;  %s460_s3 = inlined_call_operand.vmem [shape: f32[128,6], index: 3, kind: input, shape index: {}]   ;;  %s461_s2 = inlined_call_operand.vmem [shape: f32[1,128], index: 2, kind: input, shape index: {}]   ;;  %s462_s4 = inlined_call_operand.vmem [shape: f32[1,6], index: 4, kind: input, shape index: {}]   ;;  %s463_s5 = inlined_call_operand.vmem [shape: f32[16,2], index: 5, kind: output, shape index: {}]  }
   0x1   :  { %v23_v0 = vld [vmem:[%s458_s1 + $0x8] sm:$0xff]  ;;  %v22_v1 = vld [vmem:[%s458_s1] sm:$0xff]  ;;  %v130_v3 = vld [vmem:[%s460_s3 + $0x78] sm:$0xff] }
   0x2   :  { %v20_v2 = vld [vmem:[%s459_s0] sm:$0xff]  ;;  %298 = vmatprep.subr.mxu0 %v23_v0  ;;  %v129_v4 = vld [vmem:[%s460_s3 + $0x70] sm:$0xff]  ;;  %v21_v5 = vld [vmem:[%s459_s0 + $0x8] sm:$0xff]  ;;  %305 = vmatprep.subr.mxu1 %v130_v3 }
   0x3   :  { %302 = vmatprep.mubr.msk.f32.mxu0 %vm31_vm0, %v20_v2  ;;  %299 = vmatpush3.msra.mxu0 %v23_v0  ;;  %v128_v6 = vld [vmem:[%s460_s3 + $0x68] sm:$0xff]  ;;  %v127_v7 = vld [vmem:[%s460_s3 + $0x60] sm:$0xff]  ;;  %v126_v8 = vld [vmem:[%s460_s3 + $0x58] sm:$0xff] }
   0x4   :  { %300 = vmatprep.subr.mxu0 %v22_v1  ;;  %306 = vmatpush3.msra.mxu1 %v130_v3  ;;  %v125_v9 = vld [vmem:[%s460_s3 + $0x50] sm:$0xff]  ;;  %v124_v10 = vld [vmem:[%s460_s3 + $0x48] sm:$0xff]  ;;  %v123_v11 = vld [vmem:[%s460_s3 + $0x40] sm:$0xff] }
   0x5   :  { %301 = vmatpush3.msra.mxu0 %v22_v1  ;;  %307 = vmatprep.subr.mxu1 %v129_v4  ;;  %v122_v12 = vld [vmem:[%s460_s3 + $0x38] sm:$0xff]  ;;  %v121_v13 = vld [vmem:[%s460_s3 + $0x30] sm:$0xff]  ;;  %v120_v14 = vld [vmem:[%s460_s3 + $0x28] sm:$0xff] }
   0x6   :  { %303 = vmatmul.mubr.msk.f32.vlgmr.msra.gmra.mxu0 %vm31_vm0, %v21_v5  ;;  %308 = vmatpush3.msra.mxu1 %v129_v4  ;;  %v119_v15 = vld [vmem:[%s460_s3 + $0x20] sm:$0xff]  ;;  %v118_v16 = vld [vmem:[%s460_s3 + $0x18] sm:$0xff]  ;;  %v117_v17 = vld [vmem:[%s460_s3 + $0x10] sm:$0xff] }
   0x7   :  { %309 = vmatprep.subr.mxu1 %v128_v6  ;;  %v116_v18 = vld [vmem:[%s460_s3 + $0x8] sm:$0xff]  ;;  %v115_v19 = vld [vmem:[%s460_s3] sm:$0xff]  ;;  %s351_s3 = smov 126  }
   0x8   :  { %310 = vmatpush3.msra.mxu1 %v128_v6  ;;  %v270_v20 = vld [vmem:[%s461_s2] ss:$0 sm:$0xff]  ;;  %s352_s2 = smov 4  }
   0x9   :  { %311 = vmatprep.subr.mxu1 %v127_v7  ;;  %v273_v28 = vld [vmem:[%s462_s4] ss:$0 sm:$0xff]  ;;  %s353_s4 = smov 124  }
   0xa   :  { %312 = vmatpush3.msra.mxu1 %v127_v7 }
   0xb   :  { %313 = vmatprep.subr.mxu1 %v126_v8 }
   0xc   :  { %314 = vmatpush3.msra.mxu1 %v126_v8 }
   0xd   :  { %315 = vmatprep.subr.mxu1 %v125_v9 }
   0xe   :  { %316 = vmatpush3.msra.mxu1 %v125_v9 }
   0xf   :  { %317 = vmatprep.subr.mxu1 %v124_v10 }
  0x10   :  { %318 = vmatpush3.msra.mxu1 %v124_v10 }
  0x11   :  { %319 = vmatprep.subr.mxu1 %v123_v11 }
  0x12   :  { %320 = vmatpush3.msra.mxu1 %v123_v11 }
  0x13   :  { %321 = vmatprep.subr.mxu1 %v122_v12 }
  0x14   :  { %322 = vmatpush3.msra.mxu1 %v122_v12 }
  0x15   :  { %323 = vmatprep.subr.mxu1 %v121_v13 }
  0x16   :  { %324 = vmatpush3.msra.mxu1 %v121_v13 }
  0x17   :  { %325 = vmatprep.subr.mxu1 %v120_v14 }
  0x18   :  { %326 = vmatpush3.msra.mxu1 %v120_v14 }
  0x19   :  { %327 = vmatprep.subr.mxu1 %v119_v15 }
  0x1a   :  { %328 = vmatpush3.msra.mxu1 %v119_v15 }
  0x1b   :  { %329 = vmatprep.subr.mxu1 %v118_v16 }
  0x1c   :  { %330 = vmatpush3.msra.mxu1 %v118_v16 }
  0x1d   :  { %331 = vmatprep.subr.mxu1 %v117_v17 }
  0x1e   :  { %332 = vmatpush3.msra.mxu1 %v117_v17 }
  0x1f   :  { %333 = vmatprep.subr.mxu1 %v116_v18 }
  0x20   :  { %334 = vmatpush3.msra.mxu1 %v116_v18 }
  0x21   :  { %335 = vmatprep.subr.mxu1 %v115_v19 }
  0x22   :  { %336 = vmatpush3.msra.mxu1 %v115_v19 }
  0xc6   :  { %v304_v21 = vpop.f32.mrf.mxu0 }
  0xc7   :  { %v110_v22 = vadd.f32 %v304_v21, %v270_v20 }
  0xc8   :  { %v104_v23 = vpop.f32.mrf.mxu0 }
  0xc9   :  { %v105_v24 = vadd.f32 %v270_v20, %v104_v23  ;;  %v114_v26 = vmax.f32 %v110_v22, 0.0 }
  0xcb   :  { %v113_v25 = vmax.f32 %v105_v24, 0.0 }
  0xcd   :  { %337 = vmatprep.mubr.f32.mxu1 %v113_v25 }
  0xce   :  { %338 = vmatmul.mubr.f32.vlgmr.msra.gmra.mxu1 %v114_v26 }
 0x18e   :  { %v339_v27 = vpop.f32.mrf.mxu1 }
 0x18f   :  { %v210_v31 = vadd.f32 %v339_v27, %v273_v28 }
 0x190   :  { %v204_v29 = vpop.f32.mrf.mxu1 }
 0x191   :  { %v205_v30 = vadd.f32 %v273_v28, %v204_v29  ;;  %v275_v37 = vmul.f32 -1.442695, %v210_v31 }
 0x193   :  { %227 = vrot.lane.b32.xlu0 %v205_v30, %s351_s3  ;;  %v274_v36 = vmul.f32 -1.442695, %v205_v30 }
 0x195   :  { %343 = vpow2.f32 %v274_v36 }
 0x196   :  { %345 = vpow2.f32 %v275_v37 }
 0x197   :  { %229 = vrot.lane.b32.xlu0 %v210_v31, %s351_s3 }
 0x1a2   :  { %v344_v38 = vpop.eup %343 }
 0x1a3   :  { %v219_v39 = vadd.f32 1.0, %v344_v38  ;;  %v346_v40 = vpop.eup %345 }
 0x1a4   :  { %v220_v41 = vadd.f32 1.0, %v346_v40 }
 0x1a5   :  { %347 = vrcp.f32 %v219_v39 }
 0x1a6   :  { %349 = vrcp.f32 %v220_v41 }
 0x1b2   :  { %v348_v42 = vpop.eup %347 }
 0x1b3   :  { %v350_v45 = vpop.eup %349 }
 0x205   :  { %v228_v32 = vpop.permute.xlu0 %227 }
 0x206   :  { %v233_v33 = vsub.f32 %v205_v30, %v228_v32 }
 0x208   :  { %237 = vrot.lane.b32.xlu1 %v233_v33, %s351_s3 }
 0x209   :  { %v230_v34 = vpop.permute.xlu0 %229 }
 0x20a   :  { %v234_v35 = vsub.f32 %v210_v31, %v230_v34 }
 0x20c   :  { %239 = vrot.lane.b32.xlu1 %v234_v35, %s351_s3 }
 0x27a   :  { %v238_v43 = vpop.permute.xlu1 %237 }
 0x27b   :  { %v243_v44 = vmul.f32 %v348_v42, %v238_v43 }
 0x27d   :  { %247 = vrot.lane.b32.xlu0 %v243_v44, %s352_s2 }
 0x27e   :  { %v240_v46 = vpop.permute.xlu1 %239 }
 0x27f   :  { %v244_v47 = vmul.f32 %v350_v45, %v240_v46 }
 0x281   :  { %249 = vrot.lane.b32.xlu1 %v244_v47, %s352_s2 }
 0x2ef   :  { %v248_v48 = vpop.permute.xlu0 %247 }
 0x2f0   :  { %v253_v49 = vadd.f32 %v248_v48, %v205_v30 }
 0x2f2   :  { %257 = vrot.lane.b32.xlu0 %v253_v49, %s353_s4 }
 0x2f3   :  { %v250_v50 = vpop.permute.xlu1 %249 }
 0x2f4   :  { %v254_v51 = vadd.f32 %v250_v50, %v210_v31 }
 0x2f6   :  { %259 = vrot.lane.b32.xlu1 %v254_v51, %s353_s4 }
 0x364   :  { %v258_v52 = vpop.permute.xlu0 %257 }
 0x365   :  { %264 = vst.msk [vmem:[%s463_s5] sm:$0xff] %vm263_vm1, %v258_v52 }
 0x368   :  { %v260_v53 = vpop.permute.xlu1 %259 }
 0x369   :  { %265 = vst.msk [vmem:[%s463_s5 + $0x8] sm:$0xff] %vm263_vm1, %v260_v53 }

</bundles_post_ra>
